<compile_context>
chip_gen: v6e
topology: v6e:2x2x1
jax: 0.10.0
libtpu: 0.0.40
codegen_flags: <defaults>
</compile_context>

<pallas_src>
import jax
import jax.numpy as jnp
from jax.experimental import pallas as pl
from jax.experimental.pallas import tpu as pltpu


# ---------------------------------------------------------------------------
# Helpers
# ---------------------------------------------------------------------------
def _round_up(x, m):
    return ((x + m - 1) // m) * m


def _pairwise_dtype_for_device():
    """bf16 pairwise add/tanh on v6e/v7x (bf16 VPU+EUP); f32 on v5e and older."""
    try:
        kind = jax.devices()[0].device_kind.lower()
    except Exception:
        return jnp.float32
    return jnp.bfloat16 if ("v6" in kind or "v7" in kind) else jnp.float32


# ---------------------------------------------------------------------------
# Pallas kernels
# ---------------------------------------------------------------------------
def linear_kernel(x_ref, w_ref, b_ref, o_ref):
    """o = x @ w + b  (toy stand-in encoder; whole arrays resident in VMEM)."""
    o_ref[...] = (
        jnp.dot(x_ref[...], w_ref[...], preferred_element_type=jnp.float32)
        + b_ref[...]
    ).astype(o_ref.dtype)


def head_proj_kernel(img_ref, txtT_ref, w1i_t_ref, w1t_ref, b1_ref,
                     img_proj_ref, txt_projT_ref):
    """Hoisted first-layer projections, computed ONCE (not per pairwise tile).

    img_ref   : (Bi_p, D) bf16   padded image features
    txtT_ref  : (D, Bt_p) bf16   padded text features, transposed
    w1i_t_ref : (D, D)    bf16   = W1[:, :D].T
    w1t_ref   : (D, D)    bf16   = W1[:, D:]
    b1_ref    : (1, D)    f32
    img_proj_ref  : (Bi_p, D) out  img @ W1_img^T + b1   (b1 folded here)
    txt_projT_ref : (D, Bt_p) out  (txt @ W1_txt^T)^T
    """
    img_proj = jnp.dot(img_ref[...], w1i_t_ref[...],
                       preferred_element_type=jnp.float32) + b1_ref[...]
    txt_projT = jnp.dot(w1t_ref[...], txtT_ref[...],
                        preferred_element_type=jnp.float32)
    img_proj_ref[...] = img_proj.astype(img_proj_ref.dtype)
    txt_projT_ref[...] = txt_projT.astype(txt_projT_ref.dtype)


def clip_concat_head_kernel(img_proj_ref, txt_projT_ref, w2_ref, b2_ref, o_ref):
    """One (tm, tn) tile of the pairwise Tanh + Linear(D->1) head.

    img_proj_ref : (tm, D, 1) pairwise dtype  (D on sublanes, size-1 lane dim)
    txt_projT_ref: (D, tn)    pairwise dtype  (tn on lanes, lane-dense)
    w2_ref       : (D, 1)     f32             (resident across the grid)
    b2_ref       : (1, 1)     f32 in SMEM
    o_ref        : (tm, tn)   f32             logits_per_image tile
    """
    a = img_proj_ref[...]                     # (tm, D, 1)  broadcasts over lanes
    bT = txt_projT_ref[...]                   # (D, tn)
    # Pairwise hidden, fully lane-dense: (tm, D, tn). bf16 on v6e/v7x, f32 on v5e.
    h = jnp.tanh(a + bT[None, :, :])
    # Second Linear (D -> 1): weighted sublane reduce, accumulation in f32.
    w2 = w2_ref[...][None, :, :]              # (1, D, 1) f32
    logits = jnp.sum(h * w2, axis=1) + b2_ref[0, 0]   # (tm, tn) f32
    o_ref[...] = logits.astype(o_ref.dtype)


# ---------------------------------------------------------------------------
# Wrappers
# ---------------------------------------------------------------------------
def linear_pallas(x, w, b):
    """x: (M, K), w: (K, N), b: (N,) -> (M, N) f32. bf16 MXU operands, f32 acc.

    TODO(synk): tile with a grid + BlockSpecs for real encoder sizes; whole-VMEM
    residency only works at these toy stand-in shapes.
    """
    m, _ = x.shape
    _, n = w.shape
    vmem = pl.BlockSpec(memory_space=pltpu.MemorySpace.VMEM)
    return pl.pallas_call(
        linear_kernel,
        out_shape=jax.ShapeDtypeStruct((m, n), jnp.float32),
        in_specs=[vmem, vmem, vmem],
        out_specs=vmem,
    )(x.astype(jnp.bfloat16), w.astype(jnp.bfloat16),
      b.reshape(1, n).astype(jnp.float32))


def prepare_head_params(W1, b1, W2, b2):
    """One-time preprocessing of proj_layer params (hoisted out of the forward)."""
    d = W1.shape[0]
    return {
        "w1_img_t": W1[:, :d].T.astype(jnp.bfloat16),   # (D, D): img @ W1_img^T
        "w1_txt":   W1[:, d:].astype(jnp.bfloat16),     # (D, D): W1_txt @ txt^T
        "b1":  b1.reshape(1, d).astype(jnp.float32),
        "w2_col": W2.reshape(d, 1).astype(jnp.float32),  # (D, 1)
        "b2":  b2.reshape(1, 1).astype(jnp.float32),
    }


def clip_concat_head(img_feat, txt_feat, head_params, *, tm_max=128, tn_max=128,
                     pairwise_dtype=None):
    """Pairwise concat + Linear(2D->D) + Tanh + Linear(D->1). Returns (Bi, Bt)."""
    bi, d = img_feat.shape
    bt, _ = txt_feat.shape
    if pairwise_dtype is None:
        pairwise_dtype = _pairwise_dtype_for_device()

    # tn = 128 on the lane axis (lane-dense vregs, unmasked output stores).
    # tm amortizes per-step overhead, capped so the (tm, D, tn) f32 intermediate
    # stays <= ~4 MiB (fits v7x's 64 MiB VMEM alongside double-buffered tiles).
    tn = min(tn_max, _round_up(bt, 128))
    tm = min(tm_max, _round_up(bi, 8))
    tm_cap = max(8, ((4 << 20) // (d * tn * 4)) // 8 * 8)
    tm = min(tm, tm_cap)
    bi_p = _round_up(bi, tm)
    bt_p = _round_up(bt, tn)

    # Pad the pair axes once, on the small (rows, D) feature matrices (outside the
    # pairwise grid). Padded rows/cols are sliced off at the end.
    img_p = jnp.pad(img_feat, ((0, bi_p - bi), (0, 0))).astype(jnp.bfloat16)
    txtT_p = jnp.pad(txt_feat, ((0, bt_p - bt), (0, 0))).T.astype(jnp.bfloat16)

    # --- Hoisted first-layer projections: one small MXU call for the whole batch.
    # TODO(synk): tile this projection call for real CLIP sizes; whole-VMEM is fine
    # at these stand-in shapes.
    vmem = pl.BlockSpec(memory_space=pltpu.MemorySpace.VMEM)
    img_proj, txt_projT = pl.pallas_call(
        head_proj_kernel,
        out_shape=(jax.ShapeDtypeStruct((bi_p, d), pairwise_dtype),
                   jax.ShapeDtypeStruct((d, bt_p), pairwise_dtype)),
        in_specs=[vmem, vmem, vmem, vmem, vmem],
        out_specs=(vmem, vmem),
    )(img_p, txtT_p, head_params["w1_img_t"], head_params["w1_txt"],
      head_params["b1"])

    # (Bi_p, D) -> (Bi_p, D, 1): D on sublanes with a size-1 lane dim, so the
    # pairwise add broadcasts safely across the tn lanes. Pure layout plumbing.
    img_proj3 = img_proj.reshape(bi_p, d, 1)

    grid = (bi_p // tm, bt_p // tn)
    logits_p = pl.pallas_call(
        clip_concat_head_kernel,
        out_shape=jax.ShapeDtypeStruct((bi_p, bt_p), jnp.float32),
        grid=grid,
        in_specs=[
            pl.BlockSpec((tm, d, 1), lambda i, j: (i, 0, 0)),    # image projections
            pl.BlockSpec((d, tn), lambda i, j: (0, j)),          # text projections^T
            pl.BlockSpec((d, 1), lambda i, j: (0, 0)),           # W2 column (resident)
            pl.BlockSpec(memory_space=pltpu.MemorySpace.SMEM),   # b2 scalar
        ],
        out_specs=pl.BlockSpec((tm, tn), lambda i, j: (i, j)),
        compiler_params=pltpu.CompilerParams(
            dimension_semantics=("parallel", "parallel"),
            vmem_limit_bytes=32 * 1024 * 1024),
    )(img_proj3, txt_projT, head_params["w2_col"], head_params["b2"])

    return logits_p[:bi, :bt]


# ---------------------------------------------------------------------------
# Stand-in CLIP encoders (deterministic synthetic parameters)
# ---------------------------------------------------------------------------
def encode_image(image, w_img, b_img):
    # NCHW -> flatten -> linear projection (Pallas matmul)
    bsz = image.shape[0]
    flat = image.reshape(bsz, -1)
    return linear_pallas(flat, w_img, b_img)


def encode_text(tokens, emb_table, w_txt, b_txt):
    # embedding lookup + mean-pool (plain JAX glue), then Pallas matmul
    emb = emb_table[tokens]                 # (Bt, seq, hidden)
    pooled = emb.mean(axis=1)               # (Bt, hidden)
    return linear_pallas(pooled, w_txt, b_txt)


def clip_concat_forward(image, text, params, head_params):
    img_feat = encode_image(image, params["w_img"], params["b_img"])
    txt_feat = encode_text(text, params["emb_table"], params["w_txt"], params["b_txt"])
    logits_per_image = clip_concat_head(img_feat, txt_feat, head_params)
    return logits_per_image, None


# ---------------------------------------------------------------------------
# Main
# ---------------------------------------------------------------------------
if __name__ == "__main__":
    key = jax.random.PRNGKey(0)
    (k_img, k_txt, k_wimg, k_emb, k_wtxt, k_w1, k_w2) = jax.random.split(key, 7)

    # Small shapes
    B_IMG, C, H, W = 2, 3, 16, 16
    B_TXT, SEQ = 8, 8
    VOCAB, HIDDEN = 64, 32
    EMBED_DIM = 32

    # Inputs
    image = jax.random.normal(k_img, (B_IMG, C, H, W), dtype=jnp.float32)   # NCHW
    text = jax.random.randint(k_txt, (B_TXT, SEQ), 0, VOCAB, dtype=jnp.int32)

    # Stand-in encoder params + proj_layer params (nn.Linear init: N(0, 0.02), bias 0)
    params = {
        "w_img": 0.02 * jax.random.normal(k_wimg, (C * H * W, EMBED_DIM), jnp.float32),
        "b_img": jnp.zeros((EMBED_DIM,), jnp.float32),
        "emb_table": 0.02 * jax.random.normal(k_emb, (VOCAB, HIDDEN), jnp.float32),
        "w_txt": 0.02 * jax.random.normal(k_wtxt, (HIDDEN, EMBED_DIM), jnp.float32),
        "b_txt": jnp.zeros((EMBED_DIM,), jnp.float32),
        "W1": 0.02 * jax.random.normal(k_w1, (EMBED_DIM, 2 * EMBED_DIM), jnp.float32),
        "b1": jnp.zeros((EMBED_DIM,), jnp.float32),
        "W2": 0.02 * jax.random.normal(k_w2, (1, EMBED_DIM), jnp.float32),
        "b2": jnp.zeros((1,), jnp.float32),
    }

    # One-time parameter preprocessing hoisted out of the forward pass.
    head_params = prepare_head_params(params["W1"], params["b1"],
                                      params["W2"], params["b2"])

    logits, _ = clip_concat_forward(image, text, params, head_params)
    logits = jax.block_until_ready(logits)
    assert logits.shape == (B_IMG, B_TXT), logits.shape

    # Pure-JAX reference for the head (concat + MLP), using the SAME stand-in
    # encoder features and the same intentional bf16 quantization of the MXU
    # operands (features, W1) that the kernel applies.
    img_feat = encode_image(image, params["w_img"], params["b_img"])
    txt_feat = encode_text(text, params["emb_table"], params["w_txt"], params["b_txt"])
    img_q = img_feat.astype(jnp.bfloat16).astype(jnp.float32)
    txt_q = txt_feat.astype(jnp.bfloat16).astype(jnp.float32)
    W1_q = params["W1"].astype(jnp.bfloat16).astype(jnp.float32)
    feats_cat = jnp.concatenate([
        jnp.broadcast_to(img_q[:, None, :], (B_IMG, B_TXT, EMBED_DIM)),
        jnp.broadcast_to(txt_q[None, :, :], (B_IMG, B_TXT, EMBED_DIM)),
    ], axis=-1)
    h_ref = jnp.tanh(feats_cat @ W1_q.T + params["b1"])
    logits_ref = (h_ref @ params["W2"].T + params["b2"])[..., 0]

    assert jnp.allclose(logits, logits_ref, atol=2e-3, rtol=2e-2), (
        jnp.max(jnp.abs(logits - logits_ref)))

    print("KERNEL_OK")
</pallas_src>

<mosaic_0001>
module attributes {stable_mosaic.version = 11 : i64} {
  func.func @linear_kernel(%arg0: memref<2x768xbf16, #tpu.memory_space<vmem>>, %arg1: memref<768x32xbf16, #tpu.memory_space<vmem>>, %arg2: memref<1x32xf32, #tpu.memory_space<vmem>>, %arg3: memref<2x32xf32, #tpu.memory_space<vmem>>) attributes {dimension_semantics = [], scalar_prefetch = 0 : i64, scratch_operands = 0 : i64, tpu.core_type = #tpu.core_type<tc>} {
    %c0 = arith.constant 0 : index
    %c0_0 = arith.constant 0 : index
    %0 = vector.load %arg0[%c0, %c0_0] : memref<2x768xbf16, #tpu.memory_space<vmem>>, vector<2x768xbf16>
    %c0_1 = arith.constant 0 : index
    %c0_2 = arith.constant 0 : index
    %1 = vector.load %arg1[%c0_1, %c0_2] : memref<768x32xbf16, #tpu.memory_space<vmem>>, vector<768x32xbf16>
    %cst = arith.constant dense<0.000000e+00> : vector<2x32xf32>
    %2 = tpu.matmul %0, %1, %cst {dimension_numbers = #tpu.dot_dimension_numbers<[1], [0], [0], [1], [0, 0, 1, 1], [], []>} : vector<2x768xbf16>, vector<768x32xbf16>, vector<2x32xf32> -> vector<2x32xf32>
    %c0_3 = arith.constant 0 : index
    %c0_4 = arith.constant 0 : index
    %3 = vector.load %arg2[%c0_3, %c0_4] : memref<1x32xf32, #tpu.memory_space<vmem>>, vector<1x32xf32>
    %4 = vector.broadcast %3 : vector<1x32xf32> to vector<2x32xf32>
    %5 = arith.addf %2, %4 : vector<2x32xf32>
    %c0_5 = arith.constant 0 : index
    %c0_6 = arith.constant 0 : index
    %6 = vector.load %arg3[%c0_5, %c0_6] : memref<2x32xf32, #tpu.memory_space<vmem>>, vector<2x32xf32>
    tpu.vector_store %arg3[%c0_5, %c0_6], %5 {strides = array<i32>} : memref<2x32xf32, #tpu.memory_space<vmem>>, vector<2x32xf32>,
    return
  }
}

</mosaic_0001>

<bundles_post_ra>
// kernel: tpu_custom_call.1
= control target key start
LH: loop header
LB: loop body
LE: loop exit
PB: predicated region body
PF: predicated region fallthrough
CT: control target
= control target key end

     0   :  { %v125_v29 = vlaneseq  ;;  %v786_v33 = vmov 1966171168   ;;  %s961_s0 = inlined_call_operand.vmem [shape: bf16[2,768], index: 0, kind: input, shape index: {}]   ;;  %s962_s1 = inlined_call_operand.vmem [shape: bf16[768,32], index: 1, kind: input, shape index: {}]   ;;  %s963_s2 = inlined_call_operand.vmem [shape: f32[1,32], index: 2, kind: input, shape index: {}]   ;;  %s964_s3 = inlined_call_operand.hbm [shape: f32[2,32], index: 3, kind: output, shape index: {}]  }
   0x1   :  { %v715_v0 = vld [vmem:[%s962_s1 + $0x78] sm:$0xff]   ;;  %v719_v4 = vld [vmem:[%s962_s1 + $0x70] sm:$0xff]   ;;  %v723_v8 = vld [vmem:[%s962_s1 + $0x68] sm:$0xff]   ;;  %v123_v34 = vunpack.c.l.s4 %v786_v33 }
   0x2   :  { %v716_v1 = vld [vmem:[%s962_s1 + $0x38] sm:$0xff]   ;;  %647 = vmatprep.subr.bf16.mxu0 %v715_v0  ;;  %v720_v5 = vld [vmem:[%s962_s1 + $0x30] sm:$0xff]   ;;  %v724_v9 = vld [vmem:[%s962_s1 + $0x28] sm:$0xff]   ;;  %v126_v35 = vshrl.u32 %v125_v29, 7 }
   0x3   :  { %v717_v2 = vld [vmem:[%s962_s1 + $0xf8] sm:$0xff]   ;;  %648 = vmatpush3.bf16.msra.mxu0 %v716_v1  ;;  %v721_v6 = vld [vmem:[%s962_s1 + $0xf0] sm:$0xff]   ;;  %v725_v10 = vld [vmem:[%s962_s1 + $0xe8] sm:$0xff]   ;;  %v124_v39 = vunpack.c.0.s8 %v123_v34 }
   0x4   :  { %v718_v3 = vld [vmem:[%s962_s1 + $0xb8] sm:$0xff]   ;;  %669 = vmatprep.subr.bf16.mxu1 %v717_v2  ;;  %649 = vmatprep.subr.bf16.mxu0 %v719_v4  ;;  %v722_v7 = vld [vmem:[%s962_s1 + $0xb0] sm:$0xff]   ;;  %v726_v11 = vld [vmem:[%s962_s1 + $0xa8] sm:$0xff]  }
   0x5   :  { %670 = vmatpush3.bf16.msra.mxu1 %v718_v3  ;;  %v727_v12 = vld [vmem:[%s962_s1 + $0x60] sm:$0xff]   ;;  %v731_v16 = vld [vmem:[%s962_s1 + $0x58] sm:$0xff]   ;;  %v735_v20 = vld [vmem:[%s962_s1 + $0x50] sm:$0xff]   ;;  %v127_v40 = vsub.s32 %v124_v39, %v126_v35 }
   0x6   :  { %671 = vmatprep.subr.bf16.mxu1 %v721_v6  ;;  %v728_v13 = vld [vmem:[%s962_s1 + $0x20] sm:$0xff]   ;;  %v732_v17 = vld [vmem:[%s962_s1 + $0x18] sm:$0xff]   ;;  %v736_v21 = vld [vmem:[%s962_s1 + $0x10] sm:$0xff]  }
   0x7   :  { %650 = vmatpush3.bf16.msra.mxu0 %v720_v5  ;;  %v729_v14 = vld [vmem:[%s962_s1 + $0xe0] sm:$0xff]   ;;  %v733_v18 = vld [vmem:[%s962_s1 + $0xd8] sm:$0xff]   ;;  %v737_v22 = vld [vmem:[%s962_s1 + $0xd0] sm:$0xff]  }
   0x8   :  { %651 = vmatprep.subr.bf16.mxu0 %v723_v8  ;;  %v730_v15 = vld [vmem:[%s962_s1 + $0xa0] sm:$0xff]   ;;  %v734_v19 = vld [vmem:[%s962_s1 + $0x98] sm:$0xff]   ;;  %v738_v23 = vld [vmem:[%s962_s1 + $0x90] sm:$0xff]  }
   0x9   :  { %672 = vmatpush3.bf16.msra.mxu1 %v722_v7  ;;  %v739_v24 = vld [vmem:[%s962_s1 + $0x48] sm:$0xff]   ;;  %v743_v28 = vld [vmem:[%s962_s1 + $0x40] sm:$0xff]   ;;  %v748_v37 = vld [vmem:[%s962_s1 + $0x178] sm:$0xff]  }
   0xa   :  { %673 = vmatprep.subr.bf16.mxu1 %v725_v10  ;;  %v740_v25 = vld [vmem:[%s962_s1 + $0x8] sm:$0xff]   ;;  %v744_v30 = vld [vmem:[%s962_s1] sm:$0xff]   ;;  %v749_v47 = vld [vmem:[%s962_s1 + $0x138] sm:$0xff]  }
   0xb   :  { %652 = vmatpush3.bf16.msra.mxu0 %v724_v9  ;;  %v741_v26 = vld [vmem:[%s962_s1 + $0xc8] sm:$0xff]   ;;  %v745_v31 = vld [vmem:[%s962_s1 + $0xc0] sm:$0xff]   ;;  %v750_v49 = vld [vmem:[%s962_s1 + $0x170] sm:$0xff]  }
   0xc   :  { %653 = vmatprep.subr.bf16.mxu0 %v727_v12  ;;  %v742_v27 = vld [vmem:[%s962_s1 + $0x88] sm:$0xff]   ;;  %v16_v32 = vld [vmem:[%s961_s0] sm:$0x3f]  ;;  %v751_v52 = vld [vmem:[%s962_s1 + $0x130] sm:$0xff]  }
   0xd   :  { %674 = vmatpush3.bf16.msra.mxu1 %v726_v11  ;;  %v747_v36 = vld [vmem:[%s962_s1 + $0x80] sm:$0xff]   ;;  %v121_v38 = vcombine.high %v16_v32, %v16_v32  ;;  %v128_v41 = vrot.slane %v16_v32, %v127_v40  ;;  %v752_v53 = vld [vmem:[%s962_s1 + $0x168] sm:$0xff]  }
   0xe   :  { %675 = vmatprep.subr.bf16.mxu1 %v729_v14 }
   0xf   :  { %654 = vmatpush3.bf16.msra.mxu0 %v728_v13  ;;  %v135_v42 = vrot.slane %v121_v38, %v127_v40  ;;  %v136_v43 = vcombine.high %v128_v41, %v128_v41  ;;  %v144_v44 = vrot.slane %v128_v41, %v127_v40 }
  0x10   :  { %655 = vmatprep.subr.bf16.mxu0 %v731_v16 }
  0x11   :  { %676 = vmatpush3.bf16.msra.mxu1 %v730_v15  ;;  %v137_v45 = vcombine.high %v135_v42, %v135_v42  ;;  %v158_v46 = vrot.slane %v136_v43, %v127_v40  ;;  %v166_v48 = vcombine.high %v144_v44, %v144_v44 }
  0x12   :  { %677 = vmatprep.subr.bf16.mxu1 %v733_v18 }
  0x13   :  { %656 = vmatpush3.bf16.msra.mxu0 %v732_v17  ;;  %494 = vmatprep.mubr.bf16.mxu0 %v158_v46  ;;  %v167_v50 = vcombine.high %v158_v46, %v158_v46  ;;  %v165_v51 = vrot.slane %v137_v45, %v127_v40 }
  0x14   :  { %657 = vmatprep.subr.bf16.mxu0 %v735_v20 }
  0x15   :  { %678 = vmatpush3.bf16.msra.mxu1 %v734_v19  ;;  %534 = vmatprep.mubr.bf16.mxu1 %v167_v50 }
  0x16   :  { %679 = vmatprep.subr.bf16.mxu1 %v737_v22 }
  0x17   :  { %658 = vmatpush3.bf16.msra.mxu0 %v736_v21 }
  0x18   :  { %659 = vmatprep.subr.bf16.mxu0 %v739_v24 }
  0x19   :  { %680 = vmatpush3.bf16.msra.mxu1 %v738_v23 }
  0x1a   :  { %681 = vmatprep.subr.bf16.mxu1 %v741_v26 }
  0x1b   :  { %660 = vmatpush3.bf16.msra.mxu0 %v740_v25 }
  0x1c   :  { %661 = vmatprep.subr.bf16.mxu0 %v743_v28 }
  0x1d   :  { %682 = vmatpush3.bf16.msra.mxu1 %v742_v27 }
  0x1e   :  { %683 = vmatprep.subr.bf16.mxu1 %v745_v31 }
  0x1f   :  { %662 = vmatpush3.bf16.msra.mxu0 %v744_v30 }
  0x20   :  { %691 = vmatprep.subr.bf16.mxu0 %v748_v37 }
  0x21   :  { %684 = vmatpush3.bf16.msra.mxu1 %v747_v36 }
  0x22   :  { %495 = vmatmul.mubr.bf16.vlgmr.msra.gmra.mxu0 %v144_v44 }
  0x23   :  { %692 = vmatpush3.bf16.msra.mxu0 %v749_v47  ;;  %574 = vmatprep.mubr.bf16.mxu0 %v165_v51 }
  0x24   :  { %535 = vmatmul.mubr.bf16.vlgmr.msra.gmra.mxu1 %v166_v48  ;;  %693 = vmatprep.subr.bf16.mxu0 %v750_v49 }
  0x25   :  { %8 = vsyncpa [#allocation3], 0  ;;  %v753_v54 = vld [vmem:[%s962_s1 + $0x128] sm:$0xff]   ;;  %v754_v55 = vld [vmem:[%s962_s1 + $0x160] sm:$0xff]   ;;  %v151_v1 = vrot.slane %v135_v42, %v127_v40  ;;  %vm582_vm0 = vcmask 254976  }
  0x26   :  { %v755_v56 = vld [vmem:[%s962_s1 + $0x120] sm:$0xff]   ;;  %v756_v57 = vld [vmem:[%s962_s1 + $0x158] sm:$0xff]   ;;  %v758_v59 = vld [vmem:[%s962_s1 + $0x150] sm:$0xff]  }
  0x27   :  { %694 = vmatpush3.bf16.msra.mxu0 %v751_v52  ;;  %v757_v58 = vld [vmem:[%s962_s1 + $0x118] sm:$0xff]   ;;  %v759_v60 = vld [vmem:[%s962_s1 + $0x110] sm:$0xff]   ;;  %v760_v61 = vld [vmem:[%s962_s1 + $0x148] sm:$0xff]  }
  0x28   :  { %695 = vmatprep.subr.bf16.mxu0 %v752_v53  ;;  %v761_v62 = vld [vmem:[%s962_s1 + $0x108] sm:$0xff]   ;;  %v762_v63 = vld [vmem:[%s962_s1 + $0x140] sm:$0xff]  }
  0x29   :  { %v763_v0 = vld [vmem:[%s962_s1 + $0x100] sm:$0xff]   ;;  %s787_s1 = smov [#allocation2]  }
  0x2a   :  { %v598_v11 = vld [vmem:[%s963_s2] ss:$0 sm:$0xff]  ;;  %s590_s29 = sshll.u32 %s787_s1, 4  ;;  %s591_s29 = int_to_ptr.vmem [resolvable:$true] %s590_s29 }
  0x2b   :  { %696 = vmatpush3.bf16.msra.mxu0 %v753_v54  ;;  %s764_s30 = scalar_lea.vmem %s591_s29, 32  ;;  %p769_p1 = scmp.lt.s32.totalorder %s591_s29, %s591_s29 }
  0x2c   :  { %697 = vmatprep.subr.bf16.mxu0 %v754_v55  ;;  %p765_p0 = scmp.ne.s32.totalorder %s591_s29, %s764_s30  ;;  %p770_p2 = scmp.lt.s32.totalorder %s764_s30, %s764_s30 }
  0x2e   :  { %p771_p3 = por %p770_p2, %p769_p1 }
  0x2f   :  { %698 = vmatpush3.bf16.msra.mxu0 %v755_v56 }
  0x30   :  { %699 = vmatprep.subr.bf16.mxu0 %v756_v57  ;;  %p772_p4 = pnand %p771_p3, %p765_p0 }
  0x33   :  { %700 = vmatpush3.bf16.msra.mxu0 %v757_v58 }
  0x34   :  { %701 = vmatprep.subr.bf16.mxu0 %v758_v59 }
  0x37   :  { %702 = vmatpush3.bf16.msra.mxu0 %v759_v60 }
  0x38   :  { %703 = vmatprep.subr.bf16.mxu0 %v760_v61 }
  0x3b   :  { %704 = vmatpush3.bf16.msra.mxu0 %v761_v62 }
  0x3c   :  { %705 = vmatprep.subr.bf16.mxu0 %v762_v63 }
  0x3f   :  { %706 = vmatpush3.bf16.msra.mxu0 %v763_v0 }
  0x42   :  { %575 = vmatmul.mubr.bf16.vlgmr.msra.gmra.mxu0 %v151_v1 }
  0xe2   :  { %v663_v2 = vpop.f32.mrf.mxu0 }
  0xe4   :  { %v664_v3 = vpop.f32.mrf.mxu0  ;;  %v685_v4 = vpop.f32.mrf.mxu1 }
  0xe5   :  { %v665_v10 = vadd.f32 %v664_v3, %v663_v2 }
  0xe6   :  { %v666_v5 = vpop.f32.mrf.mxu0  ;;  %v686_v6 = vpop.f32.mrf.mxu1 }
  0xe7   :  { %v497_v12 = vadd.f32 %v665_v10, %v598_v11  ;;  %v687_v13 = vadd.f32 %v686_v6, %v685_v4 }
  0xe8   :  { %v667_v7 = vpop.f32.mrf.mxu0  ;;  %v688_v8 = vpop.f32.mrf.mxu1 }
  0xe9   :  { %v537_v16 = vadd.f32 %v687_v13, %v497_v12 }
  0xea   :  { %v689_v9 = vpop.f32.mrf.mxu1 }
 0x102   :  { %v707_v14 = vpop.f32.mrf.mxu0 }
 0x104   :  { %v708_v15 = vpop.f32.mrf.mxu0 }
 0x105   :  { %v709_v17 = vadd.f32 %v708_v15, %v707_v14 }
 0x106   :  { %v710_v18 = vpop.f32.mrf.mxu0 }
 0x107   :  { %v577_v19 = vadd.f32 %v709_v17, %v537_v16 }
 0x108   :  { %v711_v20 = vpop.f32.mrf.mxu0 }
 0x109   :  { %583 = vst.msk [vmem:[#allocation2] sm:$0x3] %vm582_vm0, %v577_v19 }
 0x10a   :  { %775 = shalt.err (!%p772_p4)
}
 0x10b   :  { %593 = dma.vmem_to_hbm [thread:$0]  %s591_s29, 32, %s964_s3, [#allocation3]  }
 0x10c   :  { %784 = dma.done.wait [#allocation3], 32  }
 0x10d   :  { %785 = vsyncadd [#allocation3], 4294967264 }
 0x10e   :  { %597 = vsyncpa [#allocation3], 1 }

</bundles_post_ra>
